<compile_context>
chip_gen: v7x
topology: tpu7x:2x2x1
jax: 0.10.0
libtpu: 0.0.40
codegen_flags: <defaults>
</compile_context>

<pallas_src>
import functools

import jax
import jax.numpy as jnp
from jax import lax
from jax.experimental import pallas as pl
from jax.experimental.pallas import tpu as pltpu

LANES = 128
SUBLANES = 8
ROW_ALIGN = 16          # tile rows stay a multiple of 16 (safe for bf16 packing)
CHUNK_ROWS = 512        # in-kernel compute chunk (bounds elementwise temporaries)


def _num_core_splits():
    """2 on v7x (2 TensorCores/chip), 1 on v5e/v6e."""
    try:
        kind = jax.devices()[0].device_kind.lower()
    except Exception:
        return 1
    return 2 if ("v7" in kind or "7x" in kind) else 1


def _round_up(x, m):
    return -(-x // m) * m


def _l1_sums_kernel(a_ref, b_ref, m_ref, num_ref, den_ref, *,
                    rows_per_tile, chunk_rows, total_rows, tiles_per_core):
    c = pl.program_id(0)   # core-split index (parallel)
    i = pl.program_id(1)   # streaming tile index (arbitrary / reduction)

    # Output blocks are revisited across axis 1 -> VMEM-resident accumulators.
    @pl.when(i == 0)
    def _():
        num_ref[...] = jnp.zeros_like(num_ref)
        den_ref[...] = jnp.zeros_like(den_ref)

    blk = c * tiles_per_core + i
    row_start = blk * rows_per_tile
    num_chunks = rows_per_tile // chunk_rows

    def chunk_sums(j, masked):
        # Fixed-size compute chunk; keeps Mosaic temporaries near vreg-sized.
        r0 = pl.multiple_of(j * chunk_rows, chunk_rows)
        a = a_ref[pl.ds(r0, chunk_rows), :].astype(jnp.float32)
        b = b_ref[pl.ds(r0, chunk_rows), :].astype(jnp.float32)
        m = m_ref[pl.ds(r0, chunk_rows), :].astype(jnp.float32)

        # Match PyTorch op order exactly: |mask*a - mask*b| and |mask|.
        diff = jnp.abs(m * a - m * b)
        mabs = jnp.abs(m)

        if masked:
            # Only on the slow path: mask rows past the true row count
            # (partial last tile / fully out-of-range clamped iterations).
            # The select is NaN-safe even if OOB block padding holds garbage.
            rows = row_start + r0 + lax.broadcasted_iota(
                jnp.int32, (chunk_rows, LANES), 0)
            valid = rows < total_rows
            diff = jnp.where(valid, diff, 0.0)
            mabs = jnp.where(valid, mabs, 0.0)

        # Pure vreg-wise tree-sum down to an (8, 128) partial.
        return (diff.reshape(-1, SUBLANES, LANES).sum(axis=0),
                mabs.reshape(-1, SUBLANES, LANES).sum(axis=0))

    def accumulate(masked):
        zeros = jnp.zeros((SUBLANES, LANES), jnp.float32)

        def body(j, carry):
            ns, ds_ = carry
            dn, dd = chunk_sums(j, masked)
            return ns + dn, ds_ + dd

        ns, ds_ = lax.fori_loop(0, num_chunks, body, (zeros, zeros),
                                unroll=True)
        num_ref[...] += ns
        den_ref[...] += ds_

    # Fast path (interior tiles): no iota / compare / select at all.
    is_full = row_start + rows_per_tile <= total_rows

    @pl.when(is_full)
    def _():
        accumulate(masked=False)

    # Slow path: boundary tile and clamped/out-of-range iterations (the latter
    # have row_start >= total_rows, so every row is masked -> contributes 0,
    # which also guarantees no double-counting of the last real tile).
    @pl.when(jnp.logical_not(is_full))
    def _():
        accumulate(masked=True)


@functools.partial(jax.jit, static_argnames=("rows_per_tile",))
def extended_l1_loss(a, b, mask, rows_per_tile=8192):
    assert a.shape == b.shape == mask.shape
    n_elems = a.size  # denominator of both means (PyTorch 'mean' reduction)

    flat_a = a.reshape(-1)
    flat_b = b.reshape(-1)
    flat_m = mask.reshape(-1)

    body_rows = n_elems // LANES
    body_n = body_rows * LANES
    tail_n = n_elems - body_n

    # Tail (< 128 elements): tiny, computed with plain jnp in the wrapper so we
    # never pad (and never copy) the full arrays for non-128-aligned sizes.
    if tail_n:
        ta = flat_a[body_n:].astype(jnp.float32)
        tb = flat_b[body_n:].astype(jnp.float32)
        tm = flat_m[body_n:].astype(jnp.float32)
        tail_num = jnp.sum(jnp.abs(tm * ta - tm * tb))
        tail_den = jnp.sum(jnp.abs(tm))
    else:
        tail_num = jnp.float32(0.0)
        tail_den = jnp.float32(0.0)

    if body_rows == 0:
        # Degenerate tiny input: everything fits in the tail path.
        inv_n = jnp.float32(1.0) / jnp.float32(n_elems)
        return (tail_num * inv_n) / (tail_den * inv_n)

    def body2d(flat):
        if tail_n:
            flat = flat[:body_n]
        return flat.reshape(body_rows, LANES)   # free view when 128-aligned

    a2, b2, m2 = body2d(flat_a), body2d(flat_b), body2d(flat_m)
    total_rows = body_rows

    # DMA tile rows: clamp to the array, keep a multiple of CHUNK_ROWS when
    # large (so the in-kernel chunk loop divides evenly), else of ROW_ALIGN.
    rpt = min(rows_per_tile, _round_up(total_rows, ROW_ALIGN))
    if rpt >= CHUNK_ROWS:
        rpt = (rpt // CHUNK_ROWS) * CHUNK_ROWS
    else:
        rpt = max(ROW_ALIGN, _round_up(rpt, ROW_ALIGN))
    chunk = min(CHUNK_ROWS, rpt)

    n_tiles = -(-total_rows // rpt)
    splits = min(_num_core_splits(), n_tiles)   # 1 on v5e/v6e; <=2 on v7x
    tiles_per_core = -(-n_tiles // splits)

    def in_map(c, i):
        blk = c * tiles_per_core + i
        # Clamp so the DMA never targets a block wholly past the array; such
        # iterations take the masked path and contribute exactly zero.
        return (jnp.minimum(blk, n_tiles - 1), 0)

    tile_spec = pl.BlockSpec((rpt, LANES), in_map)
    acc_spec = pl.BlockSpec((SUBLANES, LANES), lambda c, i: (c, 0))

    # Explicit VMEM budget: 3 inputs x 2 buffers x tile + chunk temporaries.
    tile_bytes = sum(rpt * LANES * jnp.dtype(x.dtype).itemsize
                     for x in (a2, b2, m2))
    vmem_limit = max(16 << 20, min(2 * tile_bytes + (8 << 20), 56 << 20))

    body_in_bytes = sum(x.size * jnp.dtype(x.dtype).itemsize
                        for x in (a2, b2, m2))
    cost = pl.CostEstimate(
        flops=7 * n_elems,
        transcendentals=0,
        bytes_accessed=body_in_bytes + 2 * splits * SUBLANES * LANES * 4,
    )

    kernel = functools.partial(
        _l1_sums_kernel,
        rows_per_tile=rpt,
        chunk_rows=chunk,
        total_rows=total_rows,
        tiles_per_core=tiles_per_core,
    )

    num_p, den_p = pl.pallas_call(
        kernel,
        out_shape=(
            jax.ShapeDtypeStruct((splits * SUBLANES, LANES), jnp.float32),
            jax.ShapeDtypeStruct((splits * SUBLANES, LANES), jnp.float32),
        ),
        grid_spec=pltpu.PrefetchScalarGridSpec(
            num_scalar_prefetch=0,
            grid=(splits, tiles_per_core),
            in_specs=[tile_spec, tile_spec, tile_spec],
            out_specs=(acc_spec, acc_spec),
        ),
        compiler_params=pltpu.CompilerParams(
            dimension_semantics=("parallel", "arbitrary"),
            vmem_limit_bytes=vmem_limit,
        ),
        cost_estimate=cost,
    )(a2, b2, m2)

    inv_n = jnp.float32(1.0) / jnp.float32(n_elems)
    l1_masked = (jnp.sum(num_p) + tail_num) * inv_n   # mean(|mask*a - mask*b|)
    normalizer = (jnp.sum(den_p) + tail_den) * inv_n  # mean(|mask|)
    return l1_masked / normalizer


def _reference(a, b, mask):
    a = a.astype(jnp.float32)
    b = b.astype(jnp.float32)
    m = mask.astype(jnp.float32)
    normalizer = jnp.mean(jnp.abs(m))
    return jnp.mean(jnp.abs(m * a - m * b)) / normalizer


if __name__ == "__main__":
    key = jax.random.PRNGKey(0)
    ka, kb, km, k1, k2, k3, k4, k5, k6 = jax.random.split(key, 9)

    # Test 1: NCHW f32, lane-aligned size (same convention as PyTorch).
    B, C, H, W = 2, 4, 16, 16
    a = jax.random.normal(ka, (B, C, H, W), dtype=jnp.float32)
    b = jax.random.normal(kb, (B, C, H, W), dtype=jnp.float32)
    mask = (jax.random.uniform(km, (B, C, H, W)) > 0.5).astype(jnp.float32)

    out = extended_l1_loss(a, b, mask)
    jax.block_until_ready(out)
    ref = _reference(a, b, mask)
    assert jnp.allclose(out, ref, rtol=1e-5, atol=1e-6), (out, ref)

    # Test 2: odd (non-128-multiple) size in bf16 exercises the body/tail
    # split, native-dtype streaming, and the masked boundary-tile path.
    shp = (3, 5, 7, 13)
    a_b = jax.random.normal(k1, shp, dtype=jnp.bfloat16)
    b_b = jax.random.normal(k2, shp, dtype=jnp.bfloat16)
    m_b = (jax.random.uniform(k3, shp) > 0.3).astype(jnp.bfloat16)

    out2 = extended_l1_loss(a_b, b_b, m_b)
    jax.block_until_ready(out2)
    ref2 = _reference(a_b, b_b, m_b)
    assert jnp.allclose(out2, ref2, rtol=2e-5, atol=1e-6), (out2, ref2)

    # Test 3: multi-tile accumulation path (small rows_per_tile override).
    shp3 = (2, 4, 32, 128)   # 32768 elems -> 256 rows -> 4 tiles of 64 rows
    a3 = jax.random.normal(k4, shp3, dtype=jnp.float32)
    b3 = jax.random.normal(k5, shp3, dtype=jnp.float32)
    m3 = (jax.random.uniform(k6, shp3) > 0.4).astype(jnp.float32)

    out3 = extended_l1_loss(a3, b3, m3, rows_per_tile=64)
    jax.block_until_ready(out3)
    ref3 = _reference(a3, b3, m3)
    assert jnp.allclose(out3, ref3, rtol=1e-5, atol=1e-6), (out3, ref3)

    print("KERNEL_OK")
</pallas_src>

<mosaic_0001>
module attributes {stable_mosaic.version = 11 : i64} {
  func.func @_l1_sums_kernel(%arg0: i32, %arg1: i32, %arg2: memref<16x128xf32, #tpu.memory_space<vmem>>, %arg3: memref<16x128xf32, #tpu.memory_space<vmem>>, %arg4: memref<16x128xf32, #tpu.memory_space<vmem>>, %arg5: memref<8x128xf32, #tpu.memory_space<vmem>>, %arg6: memref<8x128xf32, #tpu.memory_space<vmem>>) attributes {dimension_semantics = [#tpu.dimension_semantics<parallel>, #tpu.dimension_semantics<arbitrary>], iteration_bounds = array<i64: 1, 1>, scalar_prefetch = 0 : i64, scratch_operands = 0 : i64, tpu.core_type = #tpu.core_type<tc>, window_params = [{transform_indices = @transform_0, window_bounds = array<i64: 16, 128>}, {transform_indices = @transform_1, window_bounds = array<i64: 16, 128>}, {transform_indices = @transform_2, window_bounds = array<i64: 16, 128>}, {transform_indices = @transform_3, window_bounds = array<i64: 8, 128>}, {transform_indices = @transform_4, window_bounds = array<i64: 8, 128>}]} {
    %c0_i32 = arith.constant 0 : i32
    %0 = arith.cmpi eq, %arg1, %c0_i32 : i32
    %1 = arith.extui %0 : i1 to i32
    %c0_i32_0 = arith.constant 0 : i32
    %2 = arith.cmpi ne, %1, %c0_i32_0 : i32
    scf.if %2 {
      %cst = arith.constant 0.000000e+00 : f32
      %13 = vector.broadcast %cst : f32 to vector<8x128xf32>
      %c0 = arith.constant 0 : index
      %c0_5 = arith.constant 0 : index
      %14 = vector.load %arg5[%c0, %c0_5] : memref<8x128xf32, #tpu.memory_space<vmem>>, vector<8x128xf32>
      tpu.vector_store %arg5[%c0, %c0_5], %13 {strides = array<i32>} : memref<8x128xf32, #tpu.memory_space<vmem>>, vector<8x128xf32>,
      %cst_6 = arith.constant 0.000000e+00 : f32
      %15 = vector.broadcast %cst_6 : f32 to vector<8x128xf32>
      %c0_7 = arith.constant 0 : index
      %c0_8 = arith.constant 0 : index
      %16 = vector.load %arg6[%c0_7, %c0_8] : memref<8x128xf32, #tpu.memory_space<vmem>>, vector<8x128xf32>
      tpu.vector_store %arg6[%c0_7, %c0_8], %15 {strides = array<i32>} : memref<8x128xf32, #tpu.memory_space<vmem>>, vector<8x128xf32>,
    } else {
    }
    %c1_i32 = arith.constant 1 : i32
    %3 = arith.muli %arg0, %c1_i32 : i32
    %4 = arith.addi %3, %arg1 : i32
    %c16_i32 = arith.constant 16 : i32
    %5 = arith.muli %4, %c16_i32 : i32
    %c16_i32_1 = arith.constant 16 : i32
    %6 = arith.addi %5, %c16_i32_1 : i32
    %c16_i32_2 = arith.constant 16 : i32
    %7 = arith.cmpi sle, %6, %c16_i32_2 : i32
    %8 = arith.extui %7 : i1 to i32
    %c0_i32_3 = arith.constant 0 : i32
    %9 = arith.cmpi ne, %8, %c0_i32_3 : i32
    scf.if %9 {
      %cst = arith.constant 0.000000e+00 : f32
      %13 = vector.broadcast %cst : f32 to vector<8x128xf32>
      %c0_i32_5 = arith.constant 0 : i32
      %c16_i32_6 = arith.constant 16 : i32
      %14 = arith.muli %c0_i32_5, %c16_i32_6 : i32
      %15 = tpu.assume_multiple %14, 16 : i32
      %16 = arith.index_cast %15 : i32 to index
      %c0 = arith.constant 0 : index
      %17 = vector.load %arg2[%16, %c0] : memref<16x128xf32, #tpu.memory_space<vmem>>, vector<16x128xf32>
      %18 = arith.index_cast %15 : i32 to index
      %c0_7 = arith.constant 0 : index
      %19 = vector.load %arg3[%18, %c0_7] : memref<16x128xf32, #tpu.memory_space<vmem>>, vector<16x128xf32>
      %20 = arith.index_cast %15 : i32 to index
      %c0_8 = arith.constant 0 : index
      %21 = vector.load %arg4[%20, %c0_8] : memref<16x128xf32, #tpu.memory_space<vmem>>, vector<16x128xf32>
      %22 = arith.mulf %21, %17 : vector<16x128xf32>
      %23 = arith.mulf %21, %19 : vector<16x128xf32>
      %24 = arith.subf %22, %23 : vector<16x128xf32>
      %25 = math.absf %24 : vector<16x128xf32>
      %26 = math.absf %21 : vector<16x128xf32>
      %27 = vector.shape_cast %25 : vector<16x128xf32> to vector<2x8x128xf32>
      %cst_9 = arith.constant dense<0.000000e+00> : vector<8x128xf32>
      %28 = vector.multi_reduction <add>, %27, %cst_9 [0] : vector<2x8x128xf32> to vector<8x128xf32>
      %29 = vector.shape_cast %26 : vector<16x128xf32> to vector<2x8x128xf32>
      %cst_10 = arith.constant dense<0.000000e+00> : vector<8x128xf32>
      %30 = vector.multi_reduction <add>, %29, %cst_10 [0] : vector<2x8x128xf32> to vector<8x128xf32>
      %31 = arith.addf %13, %28 : vector<8x128xf32>
      %32 = arith.addf %13, %30 : vector<8x128xf32>
      %c1_i32_11 = arith.constant 1 : i32
      %c0_12 = arith.constant 0 : index
      %c0_13 = arith.constant 0 : index
      %33 = vector.load %arg5[%c0_12, %c0_13] : memref<8x128xf32, #tpu.memory_space<vmem>>, vector<8x128xf32>
      %34 = arith.addf %33, %31 : vector<8x128xf32>
      %c0_14 = arith.constant 0 : index
      %c0_15 = arith.constant 0 : index
      %35 = vector.load %arg5[%c0_14, %c0_15] : memref<8x128xf32, #tpu.memory_space<vmem>>, vector<8x128xf32>
      tpu.vector_store %arg5[%c0_14, %c0_15], %34 {strides = array<i32>} : memref<8x128xf32, #tpu.memory_space<vmem>>, vector<8x128xf32>,
      %c0_16 = arith.constant 0 : index
      %c0_17 = arith.constant 0 : index
      %36 = vector.load %arg6[%c0_16, %c0_17] : memref<8x128xf32, #tpu.memory_space<vmem>>, vector<8x128xf32>
      %37 = arith.addf %36, %32 : vector<8x128xf32>
      %c0_18 = arith.constant 0 : index
      %c0_19 = arith.constant 0 : index
      %38 = vector.load %arg6[%c0_18, %c0_19] : memref<8x128xf32, #tpu.memory_space<vmem>>, vector<8x128xf32>
      tpu.vector_store %arg6[%c0_18, %c0_19], %37 {strides = array<i32>} : memref<8x128xf32, #tpu.memory_space<vmem>>, vector<8x128xf32>,
    } else {
    }
    %true = arith.constant true
    %10 = arith.xori %7, %true : i1
    %11 = arith.extui %10 : i1 to i32
    %c0_i32_4 = arith.constant 0 : i32
    %12 = arith.cmpi ne, %11, %c0_i32_4 : i32
    scf.if %12 {
      %cst = arith.constant 0.000000e+00 : f32
      %13 = vector.broadcast %cst : f32 to vector<8x128xf32>
      %c0_i32_5 = arith.constant 0 : i32
      %c16_i32_6 = arith.constant 16 : i32
      %14 = arith.muli %c0_i32_5, %c16_i32_6 : i32
      %15 = tpu.assume_multiple %14, 16 : i32
      %16 = arith.index_cast %15 : i32 to index
      %c0 = arith.constant 0 : index
      %17 = vector.load %arg2[%16, %c0] : memref<16x128xf32, #tpu.memory_space<vmem>>, vector<16x128xf32>
      %18 = arith.index_cast %15 : i32 to index
      %c0_7 = arith.constant 0 : index
      %19 = vector.load %arg3[%18, %c0_7] : memref<16x128xf32, #tpu.memory_space<vmem>>, vector<16x128xf32>
      %20 = arith.index_cast %15 : i32 to index
      %c0_8 = arith.constant 0 : index
      %21 = vector.load %arg4[%20, %c0_8] : memref<16x128xf32, #tpu.memory_space<vmem>>, vector<16x128xf32>
      %22 = arith.mulf %21, %17 : vector<16x128xf32>
      %23 = arith.mulf %21, %19 : vector<16x128xf32>
      %24 = arith.subf %22, %23 : vector<16x128xf32>
      %25 = math.absf %24 : vector<16x128xf32>
      %26 = math.absf %21 : vector<16x128xf32>
      %27 = arith.addi %5, %15 : i32
      %28 = tpu.iota {dimensions = array<i32: 0>} : vector<16x128xi32>
      %29 = vector.broadcast %27 : i32 to vector<16x128xi32>
      %30 = arith.addi %29, %28 : vector<16x128xi32>
      %c16_i32_9 = arith.constant 16 : i32
      %31 = vector.broadcast %c16_i32_9 : i32 to vector<16x128xi32>
      %32 = arith.cmpi slt, %30, %31 : vector<16x128xi32>
      %cst_10 = arith.constant 0.000000e+00 : f32
      %33 = vector.broadcast %cst_10 : f32 to vector<16x128xf32>
      %34 = arith.select %32, %25, %33 : vector<16x128xi1>, vector<16x128xf32>
      %cst_11 = arith.constant 0.000000e+00 : f32
      %35 = vector.broadcast %cst_11 : f32 to vector<16x128xf32>
      %36 = arith.select %32, %26, %35 : vector<16x128xi1>, vector<16x128xf32>
      %37 = vector.shape_cast %34 : vector<16x128xf32> to vector<2x8x128xf32>
      %cst_12 = arith.constant dense<0.000000e+00> : vector<8x128xf32>
      %38 = vector.multi_reduction <add>, %37, %cst_12 [0] : vector<2x8x128xf32> to vector<8x128xf32>
      %39 = vector.shape_cast %36 : vector<16x128xf32> to vector<2x8x128xf32>
      %cst_13 = arith.constant dense<0.000000e+00> : vector<8x128xf32>
      %40 = vector.multi_reduction <add>, %39, %cst_13 [0] : vector<2x8x128xf32> to vector<8x128xf32>
      %41 = arith.addf %13, %38 : vector<8x128xf32>
      %42 = arith.addf %13, %40 : vector<8x128xf32>
      %c1_i32_14 = arith.constant 1 : i32
      %c0_15 = arith.constant 0 : index
      %c0_16 = arith.constant 0 : index
      %43 = vector.load %arg5[%c0_15, %c0_16] : memref<8x128xf32, #tpu.memory_space<vmem>>, vector<8x128xf32>
      %44 = arith.addf %43, %41 : vector<8x128xf32>
      %c0_17 = arith.constant 0 : index
      %c0_18 = arith.constant 0 : index
      %45 = vector.load %arg5[%c0_17, %c0_18] : memref<8x128xf32, #tpu.memory_space<vmem>>, vector<8x128xf32>
      tpu.vector_store %arg5[%c0_17, %c0_18], %44 {strides = array<i32>} : memref<8x128xf32, #tpu.memory_space<vmem>>, vector<8x128xf32>,
      %c0_19 = arith.constant 0 : index
      %c0_20 = arith.constant 0 : index
      %46 = vector.load %arg6[%c0_19, %c0_20] : memref<8x128xf32, #tpu.memory_space<vmem>>, vector<8x128xf32>
      %47 = arith.addf %46, %42 : vector<8x128xf32>
      %c0_21 = arith.constant 0 : index
      %c0_22 = arith.constant 0 : index
      %48 = vector.load %arg6[%c0_21, %c0_22] : memref<8x128xf32, #tpu.memory_space<vmem>>, vector<8x128xf32>
      tpu.vector_store %arg6[%c0_21, %c0_22], %47 {strides = array<i32>} : memref<8x128xf32, #tpu.memory_space<vmem>>, vector<8x128xf32>,
    } else {
    }
    return
  }
  func.func @transform_0(%arg0: i32, %arg1: i32) -> (i32, i32) {
    %c1_i32 = arith.constant 1 : i32
    %0 = arith.muli %arg0, %c1_i32 : i32
    %1 = arith.addi %0, %arg1 : i32
    %c0_i32 = arith.constant 0 : i32
    %2 = arith.minsi %1, %c0_i32 : i32
    %c0_i32_0 = arith.constant 0 : i32
    %c0_i32_1 = arith.constant 0 : i32
    return %2, %c0_i32_0 : i32, i32
  }
  func.func @transform_1(%arg0: i32, %arg1: i32) -> (i32, i32) {
    %c1_i32 = arith.constant 1 : i32
    %0 = arith.muli %arg0, %c1_i32 : i32
    %1 = arith.addi %0, %arg1 : i32
    %c0_i32 = arith.constant 0 : i32
    %2 = arith.minsi %1, %c0_i32 : i32
    %c0_i32_0 = arith.constant 0 : i32
    %c0_i32_1 = arith.constant 0 : i32
    return %2, %c0_i32_0 : i32, i32
  }
  func.func @transform_2(%arg0: i32, %arg1: i32) -> (i32, i32) {
    %c1_i32 = arith.constant 1 : i32
    %0 = arith.muli %arg0, %c1_i32 : i32
    %1 = arith.addi %0, %arg1 : i32
    %c0_i32 = arith.constant 0 : i32
    %2 = arith.minsi %1, %c0_i32 : i32
    %c0_i32_0 = arith.constant 0 : i32
    %c0_i32_1 = arith.constant 0 : i32
    return %2, %c0_i32_0 : i32, i32
  }
  func.func @transform_3(%arg0: i32, %arg1: i32) -> (i32, i32) {
    %c0_i32 = arith.constant 0 : i32
    %c0_i32_0 = arith.constant 0 : i32
    return %arg0, %c0_i32 : i32, i32
  }
  func.func @transform_4(%arg0: i32, %arg1: i32) -> (i32, i32) {
    %c0_i32 = arith.constant 0 : i32
    %c0_i32_0 = arith.constant 0 : i32
    return %arg0, %c0_i32 : i32, i32
  }
}

</mosaic_0001>

<bundles_post_ra>
// kernel: extended_l1_loss.1
= control target key start
LH: loop header
LB: loop body
LE: loop exit
PB: predicated region body
PF: predicated region fallthrough
CT: control target
= control target key end

     0   :  { %s270_s0 = inlined_call_operand.vmem [shape: f32[16,128], index: 0, kind: input, shape index: {}]   ;;  %s271_s1 = inlined_call_operand.vmem [shape: f32[16,128], index: 1, kind: input, shape index: {}]   ;;  %s272_s2 = inlined_call_operand.vmem [shape: f32[16,128], index: 2, kind: input, shape index: {}]   ;;  %s273_s4 = inlined_call_operand.vmem [shape: f32[8,128], index: 4, kind: output, shape index: {1}]   ;;  %s274_s3 = inlined_call_operand.vmem [shape: f32[8,128], index: 3, kind: output, shape index: {0}]  }
   0x1   :  { %v125_v0 = vld [vmem:[%s270_s0] sm:$0xff]  ;;  %v126_v1 = vld [vmem:[%s270_s0 + $0x8] sm:$0xff] }
   0x2   :  { %v127_v2 = vld [vmem:[%s271_s1] sm:$0xff]  ;;  %v128_v3 = vld [vmem:[%s271_s1 + $0x8] sm:$0xff] }
   0x3   :  { %v129_v4 = vld [vmem:[%s272_s2] sm:$0xff]  ;;  %v130_v5 = vld [vmem:[%s272_s2 + $0x8] sm:$0xff] }
   0x4   :  { %v131_v6 = vmul.f32 %v129_v4, %v125_v0  ;;  %v132_v7 = vmul.f32 %v130_v5, %v126_v1  ;;  %v133_v8 = vmul.f32 %v129_v4, %v127_v2  ;;  %v134_v9 = vmul.f32 %v130_v5, %v128_v3 }
   0x5   :  { %v139_v10 = vand.u32 2147483647, %v129_v4  ;;  %v140_v11 = vand.u32 2147483647, %v130_v5 }
   0x6   :  { %v135_v12 = vsub.f32 %v131_v6, %v133_v8  ;;  %v136_v13 = vsub.f32 %v132_v7, %v134_v9 }
   0x7   :  { %v142_v14 = vadd.f32 %v140_v11, %v139_v10 }
   0x8   :  { %v137_v15 = vand.u32 2147483647, %v135_v12  ;;  %v138_v16 = vand.u32 2147483647, %v136_v13 }
   0x9   :  { %150 = vst [vmem:[%s273_s4] sm:$0xff] %v142_v14 }
   0xa   :  { %v141_v17 = vadd.f32 %v138_v16, %v137_v15 }
   0xc   :  { %147 = vst [vmem:[%s274_s3] sm:$0xff] %v141_v17 }

</bundles_post_ra>
